<compile_context>
chip_gen: v7x
topology: tpu7x:2x2x1
jax: 0.10.0
libtpu: 0.0.40
codegen_flags: <defaults>
</compile_context>

<pallas_src>
import functools

import jax
import jax.numpy as jnp
import numpy as np
from jax.experimental import pallas as pl
from jax.experimental.pallas import tpu as pltpu


def _conv1d_im2col_kernel(x_ref, w_ref, b_ref, o_ref, *,
                          b_tile, seq_len, pad, kernel_size, c_in, kc_pad):
    """One batch tile per grid step.

    x_ref : (b_tile, C_in, L)   native Conv1d layout (no wrapper transpose)
    w_ref : (kc_pad, C_out)     im2col-folded weight, rows indexed (tap j, channel ci)
    b_ref : (1, C_out)
    o_ref : (b_tile, L, C_out)  exact-size output block (no channel padding)
    """
    # Hoisted per-step constants (JAX does not CSE iotas / broadcasts inside loops).
    lane = jax.lax.broadcasted_iota(jnp.int32, (c_in, seq_len), 1)
    zero_cl = jnp.zeros((c_in, seq_len), x_ref.dtype)
    masks = []
    for j in range(kernel_size):
        s = pad - j                                # tap j reads x[:, l + j - pad]
        masks.append(None if s == 0 else (lane >= s) & (lane < seq_len + s))
    n_zero_rows = kc_pad - kernel_size * c_in      # contraction dim padded to x8
    zero_rows = (jnp.zeros((n_zero_rows, seq_len), x_ref.dtype)
                 if n_zero_rows else None)

    w = w_ref[...]                                 # (kc_pad, C_out), VMEM resident
    bias = b_ref[...].astype(jnp.float32)          # (1, C_out)

    def body(b, carry):
        xb = x_ref[b]                              # (C_in, L)
        taps = []
        for j in range(kernel_size):
            s = pad - j
            if s == 0:
                taps.append(xb)
            else:
                # Circular lane roll (XLU) + zero the wrapped boundary lanes (VPU
                # select) -> exact zero-padded conv tap, no haloed scratch needed.
                rolled = pltpu.roll(xb, shift=s % seq_len, axis=1)
                taps.append(jnp.where(masks[j], rolled, zero_cl))
        if zero_rows is not None:
            taps.append(zero_rows)
        a = jnp.concatenate(taps, axis=0)          # (kc_pad, L) im2col operand
        # Single MXU matmul per batch element; the transposed LHS also performs the
        # NCL -> NLC layout change, so no standalone transpose pass is ever needed.
        acc = jnp.dot(a.T, w, preferred_element_type=jnp.float32)   # (L, C_out) f32
        o_ref[b] = (acc + bias).astype(o_ref.dtype)
        return carry

    if b_tile == 1:
        body(0, 0)
    else:
        jax.lax.fori_loop(0, b_tile, body, 0, unroll=b_tile <= 8)


def conv_classifier_forward(x_ncl, weight, bias, *, rows_target=4096):
    """Equivalent of ConvClassifier.forward.

    x_ncl  : (N, C_in, L)        -- PyTorch Conv1d input layout (fed as-is)
    weight : (C_out, C_in, K)    -- PyTorch Conv1d weight layout
    bias   : (C_out,)
    returns: (N, L, C_out)       -- conv1d(x).transpose(1, 2)
    """
    n, c_in, seq_len = x_ncl.shape
    c_out, c_in_w, k = weight.shape
    assert c_in == c_in_w
    if k % 2 != 1:
        # PyTorch Conv1d with padding=k//2 and even k yields output length L+1.
        raise NotImplementedError("only odd kernel_size is supported")
    pad = k // 2
    kc = k * c_in
    kc_pad = ((kc + 7) // 8) * 8

    # im2col weight: (C_out, C_in, K) -> rows (j, ci), cols C_out; zero-pad the
    # contraction dim to a sublane multiple.  Tiny, done once, weights only.
    w_kc = jnp.transpose(weight, (2, 1, 0)).reshape(kc, c_out)
    w_kc = jnp.pad(w_kc, ((0, kc_pad - kc), (0, 0))).astype(x_ncl.dtype)
    b_row = bias.reshape(1, c_out).astype(jnp.float32)

    # Batch tile: largest divisor of N with b_tile*L <= rows_target (amortize per-step
    # pipeline overhead) AND b_tile <= N//2 so grid >= 2 -> both v7x TensorCores are
    # used; the extra grid step is negligible on single-TC v5e/v6e.
    max_bt = max(1, n // 2)
    b_tile = 1
    for d in range(1, n + 1):
        if n % d == 0 and d <= max_bt and d * seq_len <= max(rows_target, seq_len):
            b_tile = d
    grid = n // b_tile

    kernel = functools.partial(
        _conv1d_im2col_kernel, b_tile=b_tile, seq_len=seq_len, pad=pad,
        kernel_size=k, c_in=c_in, kc_pad=kc_pad)

    # TODO(synk): when 128 % c_out == 0, pack 128//c_out consecutive sequence positions
    # into each 128-lane output row so the in-VMEM stores become unmasked as well
    # (HBM writeback is already exact-size here).
    return pl.pallas_call(
        kernel,
        out_shape=jax.ShapeDtypeStruct((n, seq_len, c_out), x_ncl.dtype),
        grid_spec=pltpu.PrefetchScalarGridSpec(
            num_scalar_prefetch=0,
            grid=(grid,),
            in_specs=[
                # Trailing block dims equal the full array dims -> always legal
                # regardless of (8,128) divisibility of C_in / L / C_out.
                pl.BlockSpec((b_tile, c_in, seq_len), lambda i: (i, 0, 0)),
                # Constant-index weight/bias blocks: fetched once, revisited.
                pl.BlockSpec((kc_pad, c_out), lambda i: (0, 0)),
                pl.BlockSpec((1, c_out), lambda i: (0, 0)),
            ],
            out_specs=pl.BlockSpec((b_tile, seq_len, c_out), lambda i: (i, 0, 0)),
        ),
        compiler_params=pltpu.CompilerParams(
            dimension_semantics=("parallel",),
        ),
    )(x_ncl, w_kc, b_row)


def _reference_conv1d(x_ncl, weight, bias):
    """Pure-JAX reference matching torch.nn.Conv1d(...).transpose(1, 2)."""
    k = weight.shape[-1]
    pad = k // 2
    y = jax.lax.conv_general_dilated(
        x_ncl, weight,
        window_strides=(1,),
        padding=[(pad, pad)],
        dimension_numbers=("NCH", "OIH", "NCH"),
    )
    y = y + bias[None, :, None]
    return jnp.transpose(y, (0, 2, 1))


if __name__ == "__main__":
    # Small shapes consistent with the module's forward:
    #   batch=2, input_dim (C_in)=4, seq length L=16, out_set_size (C_out)=8, kernel_size=3
    N, C_IN, L, C_OUT, K = 2, 4, 16, 8, 3

    key = jax.random.PRNGKey(0)
    kx, kw, kb = jax.random.split(key, 3)

    x = jax.random.normal(kx, (N, C_IN, L), dtype=jnp.float32)

    # Deterministic parameter init mimicking torch's default uniform(-1/sqrt(fan_in), 1/sqrt(fan_in)).
    fan_in = C_IN * K
    bound = 1.0 / np.sqrt(fan_in)
    weight = jax.random.uniform(kw, (C_OUT, C_IN, K), jnp.float32, -bound, bound)
    bias = jax.random.uniform(kb, (C_OUT,), jnp.float32, -bound, bound)

    out = conv_classifier_forward(x, weight, bias)
    out = jax.block_until_ready(out)

    ref = jax.block_until_ready(_reference_conv1d(x, weight, bias))
    np.testing.assert_allclose(np.asarray(out), np.asarray(ref), rtol=1e-5, atol=1e-5)
    assert out.shape == (N, L, C_OUT)

    print("KERNEL_OK")
</pallas_src>

<mosaic_0001>
module attributes {stable_mosaic.version = 11 : i64} {
  func.func @_conv1d_im2col_kernel(%arg0: i32, %arg1: memref<1x4x16xf32, #tpu.memory_space<vmem>>, %arg2: memref<16x8xf32, #tpu.memory_space<vmem>>, %arg3: memref<1x8xf32, #tpu.memory_space<vmem>>, %arg4: memref<1x16x8xf32, #tpu.memory_space<vmem>>) attributes {dimension_semantics = [#tpu.dimension_semantics<parallel>], iteration_bounds = array<i64: 2>, scalar_prefetch = 0 : i64, scratch_operands = 0 : i64, tpu.core_type = #tpu.core_type<tc>, window_params = [{transform_indices = @transform_0, window_bounds = array<i64: 1, 4, 16>}, {pipeline_mode = #tpu.pipeline_mode<synchronous>, transform_indices = @transform_1, window_bounds = array<i64: 16, 8>}, {pipeline_mode = #tpu.pipeline_mode<synchronous>, transform_indices = @transform_2, window_bounds = array<i64: 1, 8>}, {transform_indices = @transform_3, window_bounds = array<i64: 1, 16, 8>}]} {
    %0 = tpu.iota {dimensions = array<i32: 1>} : vector<4x16xi32>
    %cst = arith.constant 0.000000e+00 : f32
    %1 = vector.broadcast %cst : f32 to vector<4x16xf32>
    %c1_i32 = arith.constant 1 : i32
    %2 = vector.broadcast %c1_i32 : i32 to vector<4x16xi32>
    %3 = arith.cmpi sge, %0, %2 : vector<4x16xi32>
    %c17_i32 = arith.constant 17 : i32
    %4 = vector.broadcast %c17_i32 : i32 to vector<4x16xi32>
    %5 = arith.cmpi slt, %0, %4 : vector<4x16xi32>
    %6 = arith.andi %3, %5 : vector<4x16xi1>
    %c-1_i32 = arith.constant -1 : i32
    %7 = vector.broadcast %c-1_i32 : i32 to vector<4x16xi32>
    %8 = arith.cmpi sge, %0, %7 : vector<4x16xi32>
    %c15_i32 = arith.constant 15 : i32
    %9 = vector.broadcast %c15_i32 : i32 to vector<4x16xi32>
    %10 = arith.cmpi slt, %0, %9 : vector<4x16xi32>
    %11 = arith.andi %8, %10 : vector<4x16xi1>
    %cst_0 = arith.constant 0.000000e+00 : f32
    %12 = vector.broadcast %cst_0 : f32 to vector<4x16xf32>
    %c0 = arith.constant 0 : index
    %c0_1 = arith.constant 0 : index
    %13 = vector.load %arg2[%c0, %c0_1] : memref<16x8xf32, #tpu.memory_space<vmem>>, vector<16x8xf32>
    %c0_2 = arith.constant 0 : index
    %c0_3 = arith.constant 0 : index
    %14 = vector.load %arg3[%c0_2, %c0_3] : memref<1x8xf32, #tpu.memory_space<vmem>>, vector<1x8xf32>
    %c0_4 = arith.constant 0 : index
    %c0_5 = arith.constant 0 : index
    %c0_6 = arith.constant 0 : index
    %15 = vector.load %arg1[%c0_4, %c0_5, %c0_6] : memref<1x4x16xf32, #tpu.memory_space<vmem>>, vector<1x4x16xf32>
    %16 = vector.shape_cast %15 : vector<1x4x16xf32> to vector<4x16xf32>
    %c1_i32_7 = arith.constant 1 : i32
    %17 = tpu.dynamic_rotate %16 by %c1_i32_7 dim 1 : vector<4x16xf32>, i32 -> vector<4x16xf32>
    %18 = arith.select %6, %17, %1 : vector<4x16xi1>, vector<4x16xf32>
    %c15_i32_8 = arith.constant 15 : i32
    %19 = tpu.dynamic_rotate %16 by %c15_i32_8 dim 1 : vector<4x16xf32>, i32 -> vector<4x16xf32>
    %20 = arith.select %11, %19, %1 : vector<4x16xi1>, vector<4x16xf32>
    %21 = tpu.concatenate %18, %16, %20, %12 in 0 : vector<4x16xf32>, vector<4x16xf32>, vector<4x16xf32>, vector<4x16xf32> -> vector<16x16xf32>
    %22 = tpu.transpose %21, [1, 0] : vector<16x16xf32> -> vector<16x16xf32>
    %cst_9 = arith.constant dense<0.000000e+00> : vector<16x8xf32>
    %23 = tpu.matmul %22, %13, %cst_9 {dimension_numbers = #tpu.dot_dimension_numbers<[1], [0], [0], [1], [0, 0, 1, 1], [], []>} : vector<16x16xf32>, vector<16x8xf32>, vector<16x8xf32> -> vector<16x8xf32>
    %24 = vector.broadcast %14 : vector<1x8xf32> to vector<16x8xf32>
    %25 = arith.addf %23, %24 : vector<16x8xf32>
    %c0_10 = arith.constant 0 : index
    %c0_11 = arith.constant 0 : index
    %c0_12 = arith.constant 0 : index
    %26 = vector.load %arg4[%c0_10, %c0_11, %c0_12] : memref<1x16x8xf32, #tpu.memory_space<vmem>>, vector<1x16x8xf32>
    %27 = vector.shape_cast %26 : vector<1x16x8xf32> to vector<16x8xf32>
    %28 = vector.shape_cast %25 : vector<16x8xf32> to vector<1x16x8xf32>
    tpu.vector_store %arg4[%c0_10, %c0_11, %c0_12], %28 {strides = array<i32>} : memref<1x16x8xf32, #tpu.memory_space<vmem>>, vector<1x16x8xf32>,
    return
  }
  func.func @transform_0(%arg0: i32) -> (i32, i32, i32) {
    %c0_i32 = arith.constant 0 : i32
    %c0_i32_0 = arith.constant 0 : i32
    %c0_i32_1 = arith.constant 0 : i32
    return %arg0, %c0_i32, %c0_i32_0 : i32, i32, i32
  }
  func.func @transform_1(%arg0: i32) -> (i32, i32) {
    %c0_i32 = arith.constant 0 : i32
    %c0_i32_0 = arith.constant 0 : i32
    %c0_i32_1 = arith.constant 0 : i32
    return %c0_i32, %c0_i32_0 : i32, i32
  }
  func.func @transform_2(%arg0: i32) -> (i32, i32) {
    %c0_i32 = arith.constant 0 : i32
    %c0_i32_0 = arith.constant 0 : i32
    %c0_i32_1 = arith.constant 0 : i32
    return %c0_i32, %c0_i32_0 : i32, i32
  }
  func.func @transform_3(%arg0: i32) -> (i32, i32, i32) {
    %c0_i32 = arith.constant 0 : i32
    %c0_i32_0 = arith.constant 0 : i32
    %c0_i32_1 = arith.constant 0 : i32
    return %arg0, %c0_i32, %c0_i32_0 : i32, i32, i32
  }
}

</mosaic_0001>

<bundles_post_ra>
// kernel: tpu_custom_call.1
= control target key start
LH: loop header
LB: loop body
LE: loop exit
PB: predicated region body
PF: predicated region fallthrough
CT: control target
= control target key end

     0   :  { %s452_s12 = smov 0   ;;  %s482_s0 = inlined_call_operand.vmem [shape: f32[2,4,16], index: 0, kind: input, shape index: {}]   ;;  %s483_s1 = inlined_call_operand.vmem [shape: f32[16,8], index: 1, kind: input, shape index: {}]   ;;  %s484_s2 = inlined_call_operand.vmem [shape: f32[1,8], index: 2, kind: input, shape index: {}]   ;;  %s485_s3 = inlined_call_operand.vmem [shape: f32[2,16,8], index: 3, kind: output, shape index: {}]  }
   0x1 LB: > { %s380_s13 = sadd.s32 4294967295, %s427_s12   ;;  %p384_p0 = scmp.ge.s32.totalorder %s427_s12, 1  ;;  %s427_s12 = sphi %s452_s12, %s13_s12  }
   0x2   : > { %p136_p1 = scmp.lt.s32.totalorder %s427_s12, 3 }
   0x4   : > { %p137_p2 = pnand %p384_p0, %p136_p1 }
   0x5   : > { %p159_p3 = scmp.lt.s32.totalorder (!%p137_p2), %s380_s13, 1  ;;  %s429_s18 = smov (!%p137_p2), 16   ;;  %vm180_vm0 = vcmask (!%p137_p2), 1047680   ;;  %v168_v5 = vlaneseq (!%p137_p2)  ;;  %vm199_vm4 = vcmask (!%p137_p2), 1043456   ;;  %v176_v10 = vld [vmem:[%s483_s1] sm:$0xff] (!%p137_p2)  ;;  %v177_v11 = vld [vmem:[%s483_s1 + $0x8] sm:$0xff] (!%p137_p2) }
   0x6   : > { %140 = sbr.rel (%p137_p2) target bundleno = 715 (0x2cb), region = 32  ;;  %s430_s19 = smov (!%p137_p2), 113   ;;  %v405_v13 = vpack.c.bf16 (!%p137_p2), %v177_v11, %v176_v10  ;;  %vm240_vm6 = vcmask (!%p137_p2), 130048   ;;  %v388_v19 = vld [vmem:[%s484_s2] ss:$0 sm:$0xff] (!%p137_p2)  ;;  %vm322_vm7 = vcmask (!%p137_p2), 64512  }
   0x7   : > { %s431_s20 = smov (!%p137_p2), 127   ;;  %v169_v6 = vand.u32 (!%p137_p2), 127, %v168_v5 }
   0x8   : > { %406 = vmatprep.subr.bf16.mxu0 (!%p137_p2), %v405_v13 }
   0x9   : > { %vm170_vm1 = vcmp.ge.s32.totalorder (!%p137_p2), %v169_v6, 1  ;;  %vm171_vm2 = vcmp.lt.s32.totalorder (!%p137_p2), %v169_v6, 17  ;;  %vm174_vm5 = vcmp.lt.s32.totalorder (!%p137_p2), %v169_v6, 15  ;;  %408 = vmatpush3.bf16.msra.mxu0 (!%p137_p2), %v405_v13 }
   0xa   : > { %vm172_vm3 = vmand (!%p137_p2), %vm170_vm1, %vm171_vm2 }
   0xd   : > { %s487_s13 = smov (!%p159_p3, %s380_s13), 1 }
   0xe   : > { %s385_s14 = sshll.u32 %s487_s13, 2  ;;  %s393_s25 = sshll.u32 %s487_s13, 4 }
   0xf   : > { %s162_s17 = scalar_lea.vmem %s482_s0, %s385_s14  ;;  %s167_s30 = scalar_lea.vmem %s485_s3, %s393_s25 }
  0x10   : > { %v179_v0 = vld [vmem:[%s162_s17] sm:$0xf] }
  0x11   : > { %181 = vrot.lane.b32.xlu0 %v179_v0, %s429_s18  ;;  %v197_v7 = vrot.slane %v179_v0, 4 }
  0x83   : > { %v182_v1 = vpop.permute.xlu0 %181 }
  0x84   : > { %v183_v2 = vsel %vm180_vm0, %v182_v1, %v179_v0 }
  0x85   : > { %184 = vrot.lane.b32.xlu0 %v183_v2, %s429_s18 }
  0xf7   : > { %v185_v3 = vpop.permute.xlu0 %184 }
  0xf8   : > { %v186_v4 = vsel %vm180_vm0, %v185_v3, %v179_v0 }
  0xf9   : > { %188 = vrot.lane.b32.xlu1 %v186_v4, %s430_s19 }
  0xfd   : > { %192 = vrot.lane.b32.xlu1 %v186_v4, %s431_s20 }
 0x16b   : > { %v189_v8 = vpop.permute.xlu1 %188 }
 0x16c   : > { %v191_v9 = vsel %vm172_vm3, %v189_v8, 0.0 }
 0x16d   : > { %v200_v12 = vsel %vm199_vm4, %v191_v9, %v197_v7 }
 0x16e   : > { %202 = vxpose.xlu0.b32.start [1/2] (short) (narrow) %v200_v12, 16 }
 0x16f   : > { %v193_v14 = vpop.permute.xlu1 %192 }
 0x170   : > { %v195_v15 = vsel %vm174_vm5, %v193_v14, 0.0 }
 0x171   : > { %v201_v16 = vsel %vm199_vm4, %v195_v15, 0.0 }
 0x172   : > { %203 = vxpose.xlu0.b32.end [2/2] (short) (narrow) %v201_v16, 16 }
 0x1ee   : > { %v218_v17 = vpop.trf.xlu0 }
 0x1ef   : > { %402 = vmatprep.mubr.msk.f32.mxu0 %vm240_vm6, %v218_v17 }
 0x1f2   : > { %v219_v18 = vpop.trf.xlu0 }
 0x1f3   : > { %403 = vmatmul.mubr.msk.f32.vlgmr.msra.gmra.mrb[0].mxu0 %vm240_vm6, %v219_v18 }
 0x2c6   : > { %v404_v20 = vpop.f32.mrb[0].mxu0 }
 0x2c7   : > { %v319_v21 = vadd.f32 %v404_v20, %v388_v19  ;;  %v313_v22 = vpop.f32.mrb[1].mxu0 }
 0x2c8   : > { %v314_v23 = vadd.f32 %v388_v19, %v313_v22 }
 0x2c9   : > { %324 = vst.msk [vmem:[%s167_s30 + $0x8] sm:$0xff] %vm322_vm7, %v319_v21 }
 0x2ca   : > { %323 = vst.msk [vmem:[%s167_s30] sm:$0xff] %vm322_vm7, %v314_v23 }
 0x2cb PF: > { %s13_s12 = sadd.s32 1, %s427_s12  }
 0x2cc   : > { %p10_p4 = scmp.ge.s32.totalorder %s13_s12, 4  }
 0x2ce   :  { %12 = sbr.rel (!%p10_p4) target bundleno = 1 (0x1), region = 62 }

</bundles_post_ra>
